<compile_context>
chip_gen: v6e
topology: v6e:2x2x1
jax: 0.10.0
libtpu: 0.0.40
codegen_flags: <defaults>
</compile_context>

<pallas_src>
import math

import numpy as np

import jax
import jax.numpy as jnp
from jax.experimental import pallas as pl
from jax.experimental.pallas import tpu as pltpu


# ---------------------------------------------------------------------------
# PE tables (exact mirrors of the torch buffers, computed once at trace time).
# ---------------------------------------------------------------------------
def _positional_encoding_table(length, dim):
    """PositionalEncoding buffer: pe[:,0::2]=sin(pos*div), pe[:,1::2]=cos(pos*div)."""
    pe = np.zeros((length, dim), np.float32)
    position = np.arange(length, dtype=np.float64)[:, None]
    div_term = np.exp(np.arange(0, dim, 2, dtype=np.float64) * -(math.log(10000.0) / dim))
    pe[:, 0::2] = np.sin(position * div_term)
    pe[:, 1::2] = np.cos(position * div_term)
    return pe


def _temporal_positional_encoding_table(length, dim):
    """TemporalPositionalEncoding buffer, exactly as written in the torch code:
       pe[p, i]   = sin(p / 10000 ** (2*i/dim))        (even column i)
       pe[p, i+1] = cos(p / 10000 ** (2*(i+1)/dim))    (odd column i+1)
    """
    pe = np.zeros((length, dim), np.float32)
    pos = np.arange(length, dtype=np.float64)[:, None]
    i = np.arange(0, dim, 2, dtype=np.float64)
    pe[:, 0::2] = np.sin(pos / 10000.0 ** (2.0 * i / dim))
    pe[:, 1::2] = np.cos(pos / 10000.0 ** (2.0 * (i + 1.0) / dim))
    return pe


# ---------------------------------------------------------------------------
# Kernel: one (batch, T-tile) block per grid step.
# ---------------------------------------------------------------------------
def _data_embedding_kernel(x_ref, w_ref, pe_t_ref, pe_n_ref, o_ref):
    # x_ref:    (T_blk, N, F)  raw features for one batch element / T tile
    # w_ref:    (F, D)         token-embedding weight (W^T layout)
    # pe_t_ref: (T_blk, D)     2 * (bias + PositionalEncoding[t])
    # pe_n_ref: (N, D)         TemporalPositionalEncoding table (node-indexed)
    # o_ref:    (T_blk, N, D)
    tb, n, f = x_ref.shape
    d = w_ref.shape[1]

    x2 = x_ref[...].reshape(tb * n, f)                       # merge leading dims
    proj = jnp.dot(x2, w_ref[...], preferred_element_type=jnp.float32)
    proj = proj.reshape(tb, n, d)

    # out = 2*(x@W + b + pe_pos[t]) + pe_tmp[n]; pe_t_ref already = 2*(b + pe_pos)
    o_ref[...] = (2.0 * proj
                  + pe_t_ref[...][:, None, :]
                  + pe_n_ref[...][None, :, :])


def _choose_t_block(t, n, d, target_bytes=4 * 1024 * 1024):
    """Largest T tile (divisor of t; multiple of 8 unless == t) whose output
    block stays under ~4 MiB so double-buffered tiles fit scoped VMEM."""
    if t * n * d * 4 <= target_bytes:
        return t
    best = None
    tb = 8
    while tb < t:
        if t % tb == 0 and tb * n * d * 4 <= target_bytes:
            best = tb
        tb += 8
    return best if best is not None else t


def data_embedding(x, w, b, *, feature_dim):
    """Pallas equivalent of DataEmbedding.forward.

    x: (B, T, N, C) raw input; only x[..., :feature_dim] is embedded.
    w: (feature_dim, embed_dim) token-embedding weight (transposed torch Linear.weight).
    b: (embed_dim,) token-embedding bias.
    Returns (B, T, N, embed_dim) float32.
    """
    B, T, N, C = x.shape
    F, D = int(w.shape[0]), int(w.shape[1])
    assert F == feature_dim and C >= feature_dim
    assert D % 2 == 0, "embed_dim must be even (sin/cos interleave)"
    assert T <= 1000, "PositionalEncoding max_len"
    assert N <= 100, "TemporalPositionalEncoding max_len (indexed by node axis)"

    x_f = x[..., :feature_dim].astype(jnp.float32)
    b = jnp.asarray(b, jnp.float32).reshape(1, D)

    pe_pos = jnp.asarray(_positional_encoding_table(T, D))           # (T, D)
    pe_tmp = jnp.asarray(_temporal_positional_encoding_table(N, D))  # (N, D)
    pe_t = 2.0 * (pe_pos + b)                                        # fold bias; (T, D)

    t_blk = _choose_t_block(T, N, D)
    grid = (B, T // t_blk)

    flops = 2 * B * T * N * F * D + 3 * B * T * N * D
    bytes_accessed = 4 * (B * T * N * F + F * D + T * D + N * D + B * T * N * D)

    return pl.pallas_call(
        _data_embedding_kernel,
        out_shape=jax.ShapeDtypeStruct((B, T, N, D), jnp.float32),
        grid=grid,
        in_specs=[
            pl.BlockSpec((None, t_blk, N, F), lambda bi, ti: (bi, ti, 0, 0)),
            pl.BlockSpec((F, D), lambda bi, ti: (0, 0)),
            pl.BlockSpec((t_blk, D), lambda bi, ti: (ti, 0)),
            pl.BlockSpec((N, D), lambda bi, ti: (0, 0)),
        ],
        out_specs=pl.BlockSpec((None, t_blk, N, D), lambda bi, ti: (bi, ti, 0, 0)),
        compiler_params=pltpu.CompilerParams(
            dimension_semantics=("parallel", "parallel")),
        cost_estimate=pl.CostEstimate(
            flops=flops, transcendentals=0, bytes_accessed=bytes_accessed),
    )(x_f, jnp.asarray(w, jnp.float32), pe_t, pe_tmp)


# ---------------------------------------------------------------------------
# Pure-JAX reference mirroring the torch forward (dropout p=0 -> identity).
# ---------------------------------------------------------------------------
def data_embedding_reference(x, w, b, feature_dim):
    B, T, N, _ = x.shape
    D = int(w.shape[1])
    v = jnp.einsum("btnf,fd->btnd",
                   x[..., :feature_dim].astype(jnp.float32),
                   jnp.asarray(w, jnp.float32),
                   precision=jax.lax.Precision.HIGHEST) + jnp.asarray(b, jnp.float32)
    pe_pos = jnp.asarray(_positional_encoding_table(T, D))
    pe_tmp = jnp.asarray(_temporal_positional_encoding_table(N, D))
    h = v + pe_pos[None, :, None, :]            # x += position_encoding(x)
    h = h + (h + pe_tmp[None, None, :, :])      # x += temporal_position_encoding(x) -> 2h + pe
    return h


if __name__ == "__main__":
    key = jax.random.PRNGKey(0)
    B, T, N = 2, 8, 16          # batch, seq_len, num_nodes
    C_IN, FEAT, EMB = 4, 3, 32  # raw channels, feature_dim, embed_dim

    kx, kw, kb = jax.random.split(key, 3)
    # Round values to bf16-exact so MXU and XLA matmul paths agree tightly.
    x = jax.random.normal(kx, (B, T, N, C_IN), dtype=jnp.float32)
    x = x.astype(jnp.bfloat16).astype(jnp.float32)
    w = (0.1 * jax.random.normal(kw, (FEAT, EMB), dtype=jnp.float32))
    w = w.astype(jnp.bfloat16).astype(jnp.float32)
    b = (0.1 * jax.random.normal(kb, (EMB,), dtype=jnp.float32))
    b = b.astype(jnp.bfloat16).astype(jnp.float32)

    out = data_embedding(x, w, b, feature_dim=FEAT)
    jax.block_until_ready(out)

    ref = data_embedding_reference(x, w, b, FEAT)
    assert out.shape == (B, T, N, EMB) and out.dtype == jnp.float32
    max_err = float(jnp.max(jnp.abs(out - ref)))
    assert jnp.allclose(out, ref, atol=1e-4, rtol=1e-4), f"max_err={max_err}"
    print("KERNEL_OK")
</pallas_src>

<mosaic_0001>
module attributes {stable_mosaic.version = 11 : i64} {
  func.func @_data_embedding_kernel(%arg0: i32, %arg1: i32, %arg2: memref<1x8x16x3xf32, #tpu.memory_space<vmem>>, %arg3: memref<3x32xf32, #tpu.memory_space<vmem>>, %arg4: memref<8x32xf32, #tpu.memory_space<vmem>>, %arg5: memref<16x32xf32, #tpu.memory_space<vmem>>, %arg6: memref<1x8x16x32xf32, #tpu.memory_space<vmem>>) attributes {dimension_semantics = [#tpu.dimension_semantics<parallel>, #tpu.dimension_semantics<parallel>], iteration_bounds = array<i64: 2, 1>, scalar_prefetch = 0 : i64, scratch_operands = 0 : i64, tpu.core_type = #tpu.core_type<tc>, window_params = [{transform_indices = @transform_0, window_bounds = array<i64: 1, 8, 16, 3>}, {pipeline_mode = #tpu.pipeline_mode<synchronous>, transform_indices = @transform_1, window_bounds = array<i64: 3, 32>}, {transform_indices = @transform_2, window_bounds = array<i64: 8, 32>}, {pipeline_mode = #tpu.pipeline_mode<synchronous>, transform_indices = @transform_3, window_bounds = array<i64: 16, 32>}, {transform_indices = @transform_4, window_bounds = array<i64: 1, 8, 16, 32>}]} {
    %c0 = arith.constant 0 : index
    %c0_0 = arith.constant 0 : index
    %c0_1 = arith.constant 0 : index
    %c0_2 = arith.constant 0 : index
    %0 = vector.load %arg2[%c0, %c0_0, %c0_1, %c0_2] : memref<1x8x16x3xf32, #tpu.memory_space<vmem>>, vector<1x8x16x3xf32>
    %1 = vector.shape_cast %0 : vector<1x8x16x3xf32> to vector<8x16x3xf32>
    %2 = vector.shape_cast %1 : vector<8x16x3xf32> to vector<128x3xf32>
    %c0_3 = arith.constant 0 : index
    %c0_4 = arith.constant 0 : index
    %3 = vector.load %arg3[%c0_3, %c0_4] : memref<3x32xf32, #tpu.memory_space<vmem>>, vector<3x32xf32>
    %cst = arith.constant dense<0.000000e+00> : vector<128x32xf32>
    %4 = tpu.matmul %2, %3, %cst {dimension_numbers = #tpu.dot_dimension_numbers<[1], [0], [0], [1], [0, 0, 1, 1], [], []>} : vector<128x3xf32>, vector<3x32xf32>, vector<128x32xf32> -> vector<128x32xf32>
    %5 = vector.shape_cast %4 : vector<128x32xf32> to vector<8x16x32xf32>
    %cst_5 = arith.constant 2.000000e+00 : f32
    %6 = vector.broadcast %cst_5 : f32 to vector<8x16x32xf32>
    %7 = arith.mulf %6, %5 : vector<8x16x32xf32>
    %c0_6 = arith.constant 0 : index
    %c0_7 = arith.constant 0 : index
    %8 = vector.load %arg4[%c0_6, %c0_7] : memref<8x32xf32, #tpu.memory_space<vmem>>, vector<8x32xf32>
    %9 = vector.shape_cast %8 : vector<8x32xf32> to vector<8x1x32xf32>
    %10 = vector.broadcast %9 : vector<8x1x32xf32> to vector<8x16x32xf32>
    %11 = arith.addf %7, %10 : vector<8x16x32xf32>
    %c0_8 = arith.constant 0 : index
    %c0_9 = arith.constant 0 : index
    %12 = vector.load %arg5[%c0_8, %c0_9] : memref<16x32xf32, #tpu.memory_space<vmem>>, vector<16x32xf32>
    %13 = vector.shape_cast %12 : vector<16x32xf32> to vector<1x16x32xf32>
    %14 = vector.broadcast %13 : vector<1x16x32xf32> to vector<8x16x32xf32>
    %15 = arith.addf %11, %14 : vector<8x16x32xf32>
    %c0_10 = arith.constant 0 : index
    %c0_11 = arith.constant 0 : index
    %c0_12 = arith.constant 0 : index
    %c0_13 = arith.constant 0 : index
    %16 = vector.load %arg6[%c0_10, %c0_11, %c0_12, %c0_13] : memref<1x8x16x32xf32, #tpu.memory_space<vmem>>, vector<1x8x16x32xf32>
    %17 = vector.shape_cast %16 : vector<1x8x16x32xf32> to vector<8x16x32xf32>
    %18 = vector.shape_cast %15 : vector<8x16x32xf32> to vector<1x8x16x32xf32>
    tpu.vector_store %arg6[%c0_10, %c0_11, %c0_12, %c0_13], %18 {strides = array<i32>} : memref<1x8x16x32xf32, #tpu.memory_space<vmem>>, vector<1x8x16x32xf32>,
    return
  }
  func.func @transform_0(%arg0: i32, %arg1: i32) -> (i32, i32, i32, i32) {
    %c0_i32 = arith.constant 0 : i32
    %c0_i32_0 = arith.constant 0 : i32
    %c0_i32_1 = arith.constant 0 : i32
    return %arg0, %arg1, %c0_i32, %c0_i32_0 : i32, i32, i32, i32
  }
  func.func @transform_1(%arg0: i32, %arg1: i32) -> (i32, i32) {
    %c0_i32 = arith.constant 0 : i32
    %c0_i32_0 = arith.constant 0 : i32
    %c0_i32_1 = arith.constant 0 : i32
    return %c0_i32, %c0_i32_0 : i32, i32
  }
  func.func @transform_2(%arg0: i32, %arg1: i32) -> (i32, i32) {
    %c0_i32 = arith.constant 0 : i32
    %c0_i32_0 = arith.constant 0 : i32
    return %arg1, %c0_i32 : i32, i32
  }
  func.func @transform_3(%arg0: i32, %arg1: i32) -> (i32, i32) {
    %c0_i32 = arith.constant 0 : i32
    %c0_i32_0 = arith.constant 0 : i32
    %c0_i32_1 = arith.constant 0 : i32
    return %c0_i32, %c0_i32_0 : i32, i32
  }
  func.func @transform_4(%arg0: i32, %arg1: i32) -> (i32, i32, i32, i32) {
    %c0_i32 = arith.constant 0 : i32
    %c0_i32_0 = arith.constant 0 : i32
    %c0_i32_1 = arith.constant 0 : i32
    return %arg0, %arg1, %c0_i32, %c0_i32_0 : i32, i32, i32, i32
  }
}

</mosaic_0001>

<bundles_post_ra>
// kernel: tpu_custom_call.1
= control target key start
LH: loop header
LB: loop body
LE: loop exit
PB: predicated region body
PF: predicated region fallthrough
CT: control target
= control target key end

     0   :  { %9 = vsyncpa [#allocation3], 0  ;;  %s1188_s0 = inlined_call_operand.vmem [shape: f32[2,8,16,3], index: 0, kind: input, shape index: {}]   ;;  %s1189_s1 = inlined_call_operand.vmem [shape: f32[3,32], index: 1, kind: input, shape index: {}]   ;;  %s1190_s2 = inlined_call_operand.vmem [shape: f32[8,32], index: 2, kind: input, shape index: {}]   ;;  %s1191_s3 = inlined_call_operand.vmem [shape: f32[16,32], index: 3, kind: input, shape index: {}]   ;;  %s1192_s4 = inlined_call_operand.hbm [shape: f32[2,8,16,32], index: 4, kind: output, shape index: {}]  }
   0x1   :  { %11 = vsyncpa [#allocation3 + $0x1], 0  ;;  %s977_s15 = smov 0   ;;  %s979_s16 = smov 0  }
   0x2   :  { %s981_s17 = smov 0   ;;  %s983_s18 = smov 0  }
   0x3   :  { %s985_s19 = smov 0   ;;  %s987_s20 = smov 0  }
   0x4 LB: > { %s734_s21 = sadd.s32 4294967295, %s946_s20   ;;  %s735_s22 = sadd.s32 4294967294, %s946_s20   ;;  %s946_s20 = sphi %s987_s20, %s17_s20   ;;  %s942_s19 = sphi %s985_s19, %s1199_s19   ;;  %s938_s18 = sphi %s983_s18, %s1198_s18   ;;  %s934_s17 = sphi %s981_s17, %s1197_s17   ;;  %s930_s16 = sphi %s979_s16, %s1196_s16   ;;  %s926_s15 = sphi %s977_s15, %s1195_s15  }
   0x5   : > { %s29_s23 = sadd.s32 1, %s942_s19  ;;  %s134_s24 = sadd.s32 1, %s934_s17 }
   0x6   : > { %p31_p0 = scmp.ge.s32.totalorder %s29_s23, 2  ;;  %p144_p1 = scmp.ne.s32.totalorder %s934_s17, %s930_s16 }
   0x7   : > { %p145_p2 = scmp.eq.s32.totalorder %s734_s21, 1  ;;  %p150_p3 = scmp.ne.s32.totalorder %s930_s16, %s926_s15 }
   0x8   : > { %s1201_s23 = smov (%p31_p0, %s29_s23), 0  ;;  %p151_p5 = scmp.eq.s32.totalorder %s735_s22, 1 }
   0x9   : > { %p1017_p4 = por %p145_p2, %p144_p1  ;;  %s129_s26 = ssub.s32 %s942_s19, %s1201_s23 }
   0xa   : > { %p739_p6 = scmp.ge.s32.totalorder %s946_s20, 1  ;;  %p132_p7 = scmp.eq.s32.totalorder %s129_s26, 0 }
   0xb   : > { %p1024_p8 = por %p151_p5, %p150_p3  ;;  %p196_p9 = scmp.lt.s32.totalorder %s946_s20, 3 }
   0xc   : > { %s1030_s28 = scalar_select %p132_p7, %s934_s17, %s134_s24  }
   0xd   : > { %p197_p10 = pnand %p739_p6, %p196_p9 }
   0xe   : > { %p232_p11 = scmp.lt.s32.totalorder (!%p197_p10), %s938_s18, 1  ;;  %s228_s12 = sand.u32 (!%p197_p10), 1, %s930_s16  }
   0xf   : > { %200 = sbr.rel (%p197_p10) target bundleno = 254 (0xfe), region = 36  ;;  %s740_s13 = sshll.u32 (!%p197_p10), %s228_s12, 7 }
  0x10   : > { %s1082_s26 = scalar_lea.vmem (!%p197_p10), [#allocation2], %s740_s13  ;;  %s766_s29 = sshll.u32 (!%p197_p10), %s938_s18, 11 }
  0x11   : > { %s637_s30 = sshll.u32 (!%p197_p10), %s1082_s26, 4  ;;  %s1143_s7 = scalar_lea.sflag (!%p197_p10), [#allocation3], %s228_s12  ;;  %s1129_s30 = int_to_ptr.vmem [resolvable:$true] %s637_s30 }
  0x12   : > { %s870_s8 = scalar_lea.vmem (!%p197_p10), %s1129_s30, 2048 }
  0x13   : > { %p871_p12 = scmp.ne.s32.totalorder (!%p197_p10), %s1129_s30, %s870_s8 }
  0x14   : > { %v263_v0 = vld [vmem:[%s1189_s1] sm:$0x7]  ;;  %vm313_vm0 = vcmask 1042432   ;;  %s233_s5 = scalar_select %p232_p11, %s938_s18, 1  ;;  %vm264_vm1 = vcmask 23552   ;;  %v484_v19 = vlaneseq  ;;  %v1069_v42 = vld [vmem:[%s1191_s3 + $0x8] sm:$0xff] }
  0x15   : > { %784 = vmatprep.subr.msk.mxu0 %vm313_vm0, %v263_v0  ;;  %810 = vmatprep.subr.msk.mxu1 %vm313_vm0, %v263_v0  ;;  %v948_v17 = vmov 1966171168   ;;  %v478_v22 = vld [vmem:[%s1190_s2] sm:$0xff]  ;;  %vm603_vm2 = vcmask 261120   ;;  %p872_p13 = pnand %p871_p12, %p1017_p4 }
  0x16   : > { %785 = vmatpush3.msk.msra.mxu0 %vm313_vm0, %v263_v0  ;;  %811 = vmatpush3.msk.msra.mxu1 %vm313_vm0, %v263_v0  ;;  %s765_s6 = sshll.u32 %s233_s5, 7  ;;  %v482_v18 = vunpack.c.l.s4 %v948_v17  ;;  %v485_v21 = vshrl.u32 %v484_v19, 7  ;;  %v480_v24 = vcombine.high %v478_v22, %v478_v22  ;;  %v1074_v49 = vld [vmem:[%s1191_s3] sm:$0xff] }
  0x17   : > { %s240_s9 = scalar_lea.vmem %s1188_s0, %s765_s6  ;;  %s1127_s6 = scalar_lea.hbm %s1192_s4, %s766_s29 }
  0x18   : > { %v247_v1 = vld [vmem:[%s240_s9] sm:$0xff]  ;;  %v248_v3 = vld [vmem:[%s240_s9 + $0x8] sm:$0xff]  ;;  %v249_v5 = vld [vmem:[%s240_s9 + $0x10] sm:$0xff]  ;;  %v483_v20 = vunpack.c.0.s8 %v482_v18  ;;  %v1059_v28 = vsub.s32 0, %v485_v21  ;;  %p873_p0 = pneg %p872_p13 }
  0x19   : > { %v255_v2 = vld [vmem:[%s240_s9 + $0x40] sm:$0xff]  ;;  %786 = vmatprep.mubr.msk.f32.mxu0 %vm264_vm1, %v247_v1  ;;  %v256_v4 = vld [vmem:[%s240_s9 + $0x48] sm:$0xff]  ;;  %v257_v6 = vld [vmem:[%s240_s9 + $0x50] sm:$0xff] }
  0x1a   : > { %798 = vmatprep.mubr.msk.f32.mxu1 %vm264_vm1, %v255_v2  ;;  %787 = vmatmul.mubr.msk.f32.vlgmr.msra.gmra.mxu0 %vm264_vm1, %v248_v3  ;;  %v250_v7 = vld [vmem:[%s240_s9 + $0x18] sm:$0xff]  ;;  %v251_v9 = vld [vmem:[%s240_s9 + $0x20] sm:$0xff]  ;;  %v252_v11 = vld [vmem:[%s240_s9 + $0x28] sm:$0xff]  ;;  %v486_v23 = vsub.s32 %v483_v20, %v485_v21 }
  0x1b   : > { %799 = vmatmul.mubr.msk.f32.vlgmr.msra.gmra.mxu1 %vm264_vm1, %v256_v4  ;;  %789 = vmatprep.mubr.msk.f32.mxu0 %vm264_vm1, %v249_v5  ;;  %v258_v8 = vld [vmem:[%s240_s9 + $0x58] sm:$0xff]  ;;  %v259_v10 = vld [vmem:[%s240_s9 + $0x60] sm:$0xff]  ;;  %v260_v12 = vld [vmem:[%s240_s9 + $0x68] sm:$0xff] }
  0x1c   : > { %801 = vmatprep.mubr.msk.f32.mxu1 %vm264_vm1, %v257_v6  ;;  %v253_v13 = vld [vmem:[%s240_s9 + $0x30] sm:$0xff]  ;;  %v254_v15 = vld [vmem:[%s240_s9 + $0x38] sm:$0xff]  ;;  %v487_v25 = vrot.slane %v478_v22, %v486_v23  ;;  %v494_v26 = vrot.slane %v480_v24, %v486_v23 }
  0x1d   : > { %v261_v14 = vld [vmem:[%s240_s9 + $0x70] sm:$0xff]  ;;  %v262_v16 = vld [vmem:[%s240_s9 + $0x78] sm:$0xff]  ;;  %s949_s9 = smov [#allocation2]  }
  0x1e   : > { %790 = vmatmul.mubr.msk.f32.gmra.mxu0 %vm264_vm1, %v250_v7  ;;  %v503_v27 = vrot.slane %v487_v25, %v486_v23  ;;  %v510_v29 = vrot.slane %v494_v26, %v486_v23  ;;  %v495_v30 = vcombine.high %v487_v25, %v487_v25  ;;  %v496_v31 = vcombine.high %v494_v26, %v494_v26  ;;  %s874_s10 = sshll.u32 %s949_s9, 4  ;;  %s875_s10 = int_to_ptr.vmem [resolvable:$false] %s874_s10 }
  0x1f   : > { %802 = vmatmul.mubr.msk.f32.gmra.mxu1 %vm264_vm1, %v258_v8  ;;  %792 = vmatprep.mubr.msk.f32.mxu0 %vm264_vm1, %v251_v9  ;;  %s876_s11 = scalar_lea.vmem %s875_s10, 4096  ;;  %p877_p1 = scmp.lt.s32.totalorder %s1129_s30, %s875_s10 }
  0x20   : > { %804 = vmatprep.mubr.msk.f32.mxu1 %vm264_vm1, %v259_v10  ;;  %v532_v32 = vrot.slane %v503_v27, %v1059_v28  ;;  %v548_v33 = vrot.slane %v510_v29, %v1059_v28  ;;  %v517_v36 = vrot.slane %v495_v30, %v486_v23  ;;  %v524_v37 = vrot.slane %v496_v31, %v486_v23  ;;  %p878_p2 = scmp.lt.s32.totalorder %s876_s11, %s870_s8 }
  0x21   : > { %v525_v38 = vcombine.high %v503_v27, %v503_v27  ;;  %v526_v39 = vcombine.high %v510_v29, %v510_v29 }
  0x22   : > { %793 = vmatmul.mubr.msk.f32.gmra.mxu0 %vm264_vm1, %v252_v11  ;;  %v536_v51 = vrot.slane %v517_v36, %v1059_v28  ;;  %v552_v53 = vrot.slane %v524_v37, %v1059_v28  ;;  %v527_v0 = vcombine.high %v517_v36, %v517_v36  ;;  %v528_v1 = vcombine.high %v524_v37, %v524_v37  ;;  %p879_p3 = por %p878_p2, %p877_p1 }
  0x23   : > { %805 = vmatmul.mubr.msk.f32.gmra.mxu1 %vm264_vm1, %v260_v12  ;;  %795 = vmatprep.mubr.msk.f32.mxu0 %vm264_vm1, %v253_v13  ;;  %v540_v54 = vrot.slane %v525_v38, %v1059_v28  ;;  %v556_v55 = vrot.slane %v526_v39, %v1059_v28 }
  0x24   : > { %807 = vmatprep.mubr.msk.f32.mxu1 %vm264_vm1, %v261_v14  ;;  %v544_v18 = vrot.slane %v527_v0, %v1059_v28  ;;  %v560_v19 = vrot.slane %v528_v1, %v1059_v28  ;;  %p880_p5 = pnand %p879_p3, %p873_p0 }
  0x26   : > { %796 = vmatmul.mubr.msk.f32.gmra.mxu0 %vm264_vm1, %v254_v15 }
  0x27   : > { %808 = vmatmul.mubr.msk.f32.gmra.mxu1 %vm264_vm1, %v262_v16 }
  0xda   : > { %v788_v34 = vpop.f32.mrf.mxu0 }
  0xdb   : > { %v800_v35 = vpop.f32.mrf.mxu1  ;;  %v463_v40 = vmul.f32 2.0, %v788_v34 }
  0xdc   : > { %v471_v41 = vmul.f32 2.0, %v800_v35  ;;  %v383_v43 = vpop.f32.mrf.mxu0 }
  0xdd   : > { %v423_v44 = vpop.f32.mrf.mxu1  ;;  %v570_v45 = vadd.f32 %v532_v32, %v463_v40  ;;  %v462_v47 = vmul.f32 2.0, %v383_v43 }
  0xde   : > { %v578_v46 = vadd.f32 %v548_v33, %v471_v41  ;;  %v470_v48 = vmul.f32 2.0, %v423_v44  ;;  %v791_v50 = vpop.f32.mrf.mxu0 }
  0xdf   : > { %v803_v52 = vpop.f32.mrf.mxu1  ;;  %v588_v56 = vadd.f32 %v1069_v42, %v570_v45  ;;  %v569_v58 = vadd.f32 %v532_v32, %v462_v47  ;;  %v465_v60 = vmul.f32 2.0, %v791_v50 }
  0xe0   : > { %v596_v57 = vadd.f32 %v1069_v42, %v578_v46  ;;  %v577_v59 = vadd.f32 %v548_v33, %v470_v48  ;;  %v473_v61 = vmul.f32 2.0, %v803_v52  ;;  %v393_v62 = vpop.f32.mrf.mxu0 }
  0xe1   : > { %v433_v63 = vpop.f32.mrf.mxu1  ;;  %605 = vst.msk [vmem:[%s1082_s26 + $0x8] sm:$0xff] %vm603_vm2, %v588_v56  ;;  %v587_v2 = vadd.f32 %v1074_v49, %v569_v58  ;;  %v464_v4 = vmul.f32 2.0, %v393_v62  ;;  %v572_v6 = vadd.f32 %v536_v51, %v465_v60 }
  0xe2   : > { %613 = vst.msk [vmem:[%s1082_s26 + $0x48] sm:$0xff] %vm603_vm2, %v596_v57  ;;  %v595_v3 = vadd.f32 %v1074_v49, %v577_v59  ;;  %v472_v5 = vmul.f32 2.0, %v433_v63  ;;  %v580_v7 = vadd.f32 %v552_v53, %v473_v61  ;;  %v794_v8 = vpop.f32.mrf.mxu0 }
  0xe3   : > { %v806_v9 = vpop.f32.mrf.mxu1  ;;  %604 = vst.msk [vmem:[%s1082_s26] sm:$0xff] %vm603_vm2, %v587_v2  ;;  %v571_v10 = vadd.f32 %v536_v51, %v464_v4  ;;  %v467_v12 = vmul.f32 2.0, %v794_v8  ;;  %v590_v14 = vadd.f32 %v1069_v42, %v572_v6 }
  0xe4   : > { %612 = vst.msk [vmem:[%s1082_s26 + $0x40] sm:$0xff] %vm603_vm2, %v595_v3  ;;  %v579_v11 = vadd.f32 %v552_v53, %v472_v5  ;;  %v475_v13 = vmul.f32 2.0, %v806_v9  ;;  %v598_v15 = vadd.f32 %v1069_v42, %v580_v7  ;;  %v403_v16 = vpop.f32.mrf.mxu0 }
  0xe5   : > { %v443_v17 = vpop.f32.mrf.mxu1  ;;  %v589_v20 = vadd.f32 %v1074_v49, %v571_v10  ;;  %v574_v22 = vadd.f32 %v540_v54, %v467_v12  ;;  %607 = vst.msk [vmem:[%s1082_s26 + $0x18] sm:$0xff] %vm603_vm2, %v590_v14  ;;  %v466_v24 = vmul.f32 2.0, %v403_v16 }
  0xe6   : > { %v597_v21 = vadd.f32 %v1074_v49, %v579_v11  ;;  %v582_v23 = vadd.f32 %v556_v55, %v475_v13  ;;  %615 = vst.msk [vmem:[%s1082_s26 + $0x58] sm:$0xff] %vm603_vm2, %v598_v15  ;;  %v474_v25 = vmul.f32 2.0, %v443_v17  ;;  %v797_v26 = vpop.f32.mrf.mxu0 }
  0xe7   : > { %v809_v27 = vpop.f32.mrf.mxu1  ;;  %606 = vst.msk [vmem:[%s1082_s26 + $0x10] sm:$0xff] %vm603_vm2, %v589_v20  ;;  %v592_v28 = vadd.f32 %v1069_v42, %v574_v22  ;;  %v469_v30 = vmul.f32 2.0, %v797_v26  ;;  %v573_v32 = vadd.f32 %v540_v54, %v466_v24 }
  0xe8   : > { %614 = vst.msk [vmem:[%s1082_s26 + $0x50] sm:$0xff] %vm603_vm2, %v597_v21  ;;  %v600_v29 = vadd.f32 %v1069_v42, %v582_v23  ;;  %v477_v31 = vmul.f32 2.0, %v809_v27  ;;  %v581_v33 = vadd.f32 %v556_v55, %v474_v25  ;;  %v413_v34 = vpop.f32.mrf.mxu0 }
  0xe9   : > { %v453_v35 = vpop.f32.mrf.mxu1  ;;  %609 = vst.msk [vmem:[%s1082_s26 + $0x28] sm:$0xff] %vm603_vm2, %v592_v28  ;;  %v576_v36 = vadd.f32 %v544_v18, %v469_v30  ;;  %v468_v38 = vmul.f32 2.0, %v413_v34  ;;  %v591_v40 = vadd.f32 %v1074_v49, %v573_v32 }
  0xea   : > { %617 = vst.msk [vmem:[%s1082_s26 + $0x68] sm:$0xff] %vm603_vm2, %v600_v29  ;;  %v584_v37 = vadd.f32 %v560_v19, %v477_v31  ;;  %v476_v39 = vmul.f32 2.0, %v453_v35  ;;  %v599_v41 = vadd.f32 %v1074_v49, %v581_v33 }
  0xeb   : > { %v594_v43 = vadd.f32 %v1069_v42, %v576_v36  ;;  %v575_v45 = vadd.f32 %v544_v18, %v468_v38  ;;  %608 = vst.msk [vmem:[%s1082_s26 + $0x20] sm:$0xff] %vm603_vm2, %v591_v40 }
  0xec   : > { %v602_v44 = vadd.f32 %v1069_v42, %v584_v37  ;;  %v583_v46 = vadd.f32 %v560_v19, %v476_v39  ;;  %616 = vst.msk [vmem:[%s1082_s26 + $0x60] sm:$0xff] %vm603_vm2, %v599_v41 }
  0xed   : > { %611 = vst.msk [vmem:[%s1082_s26 + $0x38] sm:$0xff] %vm603_vm2, %v594_v43  ;;  %v593_v42 = vadd.f32 %v1074_v49, %v575_v45 }
  0xee   : > { %619 = vst.msk [vmem:[%s1082_s26 + $0x78] sm:$0xff] %vm603_vm2, %v602_v44  ;;  %v601_v47 = vadd.f32 %v1074_v49, %v583_v46 }
  0xef   : > { %610 = vst.msk [vmem:[%s1082_s26 + $0x30] sm:$0xff] %vm603_vm2, %v593_v42 }
  0xf0   : > { %618 = vst.msk [vmem:[%s1082_s26 + $0x70] sm:$0xff] %vm603_vm2, %v601_v47 }
  0xf1   : > { %883 = shalt.err (!%p880_p5)
}
  0xf2   : > { %s884_s12 = scalar_lea.hbm %s1127_s6, 2048  ;;  %s888_s21 = scalar_lea.hbm %s1192_s4, 4096 }
  0xf3   : > { %p885_p6 = scmp.ne.s32.totalorder %s1127_s6, %s884_s12  ;;  %p889_p10 = scmp.lt.s32.totalorder %s1127_s6, %s1192_s4 }
  0xf4   : > { %p890_p11 = scmp.lt.s32.totalorder %s888_s21, %s884_s12 }
  0xf5   : > { %p886_p7 = pnand %p885_p6, %p1017_p4 }
  0xf6   : > { %p891_p12 = por %p890_p11, %p889_p10 }
  0xf7   : > { %p887_p9 = pneg %p886_p7 }
  0xf9   : > { %p892_p13 = pnand %p891_p12, %p887_p9 }
  0xfb   : > { %895 = shalt.err (!%p892_p13)
}
  0xfc   : > { %s950_s26 = smov 128   ;;  %s951_s29 = smov 8  }
  0xfd   : > { %812 = dma.vmem_to_hbm [thread:$0]  (%p1017_p4), %s1129_s30, 2048, %s1127_s6, %s1143_s7, %s950_s26, %s950_s26, %s951_s29  }
  0xfe PF: > { %p818_p0 = scmp.ge.s32.totalorder %s946_s20, 2  ;;  %s652_s18 = sand.u32 1, %s926_s15  }
  0xff   : > { %s653_s5 = scalar_lea.sflag [#allocation3], %s652_s18 }
 0x100   : > { %p815_p1 = pnand %p818_p0, %p1024_p8 }
 0x102   : > { %p816_p2 = pneg %p815_p1 }
 0x104   : > { %921 = dma.done.wait (%p816_p2), %s653_s5, 2048  }
 0x105   : > { %923 = vsyncadd (%p816_p2), %s653_s5, 4294965248  ;;  %s17_s20 = sadd.s32 1, %s946_s20   ;;  %s1195_s15 = smov %s930_s16 }
 0x106   : > { %p14_p3 = scmp.ge.s32.totalorder %s17_s20, 4   ;;  %s1196_s16 = smov %s934_s17 }
 0x107   : > { %s1197_s17 = smov %s1030_s28  ;;  %s1198_s18 = smov %s942_s19 }
 0x108   : > { %s1199_s19 = smov %s1201_s23  ;;  %16 = sbr.rel (!%p14_p3) target bundleno = 4 (0x4), region = 74 }
 0x10d   :  { %658 = vsyncpa [#allocation3], 1 }
 0x10e   :  { %660 = vsyncpa [#allocation3 + $0x1], 1 }

</bundles_post_ra>
